<compile_context>
chip_gen: v7x
topology: tpu7x:2x2x1
jax: 0.10.0
libtpu: 0.0.40
codegen_flags: <defaults>
</compile_context>

<pallas_src>
import math

import jax
import jax.numpy as jnp
from jax.experimental import pallas as pl
from jax.experimental.pallas import tpu as pltpu

_LOG2 = math.log(2.0)          # Python float: folded into the kernel as a literal
_SOFTPLUS_THRESHOLD = 20.0     # torch.nn.functional.softplus default threshold

_LANES = 512                   # lane-dense width (multiple of 128)
_TARGET_TILE_BYTES = 2 * 1024 * 1024   # ~2 MiB/tile; safe for v5e/v6e/v7x VMEM


def _shifted_softplus_kernel(x_ref, o_ref):
    # Compute in f32 (v5e has no bf16 VPU/EUP path); cast back at the store.
    x = x_ref[...].astype(jnp.float32)
    safe_x = jnp.minimum(x, _SOFTPLUS_THRESHOLD)          # avoid exp overflow
    sp = jnp.where(x > _SOFTPLUS_THRESHOLD, x, jnp.log1p(jnp.exp(safe_x)))
    o_ref[...] = (sp - _LOG2).astype(o_ref.dtype)


def shifted_softplus(x):
    """ShiftedSoftplus applied elementwise via a Pallas TPU kernel.

    Accepts any shape/dtype; internally flattened to a lane-dense 2-D layout.
    """
    orig_shape = x.shape
    dtype = x.dtype
    flat = x.reshape(-1)
    total = flat.shape[0]

    itemsize = jnp.dtype(dtype).itemsize
    # Minimum sublane multiple for packed layouts: f32 -> 8, bf16 -> 16, int8/fp8 -> 32.
    sublane = {4: 8, 2: 16, 1: 32}.get(itemsize, 8)

    # Target tile rows for ~2 MiB tiles, rounded down to the sublane multiple.
    tm_target = max(sublane,
                    (_TARGET_TILE_BYTES // (_LANES * itemsize)) // sublane * sublane)

    rows_needed = pl.cdiv(total, _LANES)
    if rows_needed <= tm_target:
        # Small input: single full block (grid of 1), rows padded to sublane multiple.
        tm = max(sublane, pl.cdiv(rows_needed, sublane) * sublane)
    else:
        tm = tm_target  # large input: cdiv(rows, tm) >= 2 -> both v7x TCs participate

    rows = pl.cdiv(rows_needed, tm) * tm        # whole number of tiles
    padded_total = rows * _LANES
    if padded_total != total:
        flat = jnp.pad(flat, (0, padded_total - total))
    x2 = flat.reshape(rows, _LANES)

    grid = rows // tm
    n_elems = padded_total

    out = pl.pallas_call(
        _shifted_softplus_kernel,
        out_shape=jax.ShapeDtypeStruct((rows, _LANES), dtype),
        grid=(grid,),
        in_specs=[pl.BlockSpec((tm, _LANES), lambda i: (i, 0))],
        out_specs=pl.BlockSpec((tm, _LANES), lambda i: (i, 0)),
        compiler_params=pltpu.CompilerParams(
            dimension_semantics=("parallel",),
        ),
        cost_estimate=pl.CostEstimate(
            flops=5 * n_elems,
            transcendentals=2 * n_elems,          # exp + log1p per element
            bytes_accessed=2 * n_elems * itemsize,
        ),
    )(x2)

    return out.reshape(-1)[:total].reshape(orig_shape)


def _reference(x):
    xf = x.astype(jnp.float32)
    sp = jnp.where(xf > _SOFTPLUS_THRESHOLD, xf,
                   jnp.log1p(jnp.exp(jnp.minimum(xf, _SOFTPLUS_THRESHOLD))))
    return (sp - _LOG2).astype(x.dtype)


if __name__ == "__main__":
    key = jax.random.PRNGKey(0)

    # Shape consistent with SchNet usage: (num_atoms, hidden) = (64, 128).
    x = jax.random.normal(key, (64, 128), dtype=jnp.float32) * 5.0
    y = jax.block_until_ready(shifted_softplus(x))
    assert jnp.allclose(y, _reference(x), atol=1e-6, rtol=1e-6), "mismatch (64,128)"

    # Awkward shape (non-multiple of 128, exercises lane-dense padding path).
    x2 = jax.random.normal(jax.random.PRNGKey(1), (7, 33), dtype=jnp.float32) * 10.0
    y2 = jax.block_until_ready(shifted_softplus(x2))
    assert jnp.allclose(y2, _reference(x2), atol=1e-6, rtol=1e-6), "mismatch (7,33)"

    print("KERNEL_OK")
</pallas_src>

<mosaic_0001>
module attributes {stable_mosaic.version = 11 : i64} {
  func.func @_shifted_softplus_kernel(%arg0: i32, %arg1: memref<16x512xf32, #tpu.memory_space<vmem>>, %arg2: memref<16x512xf32, #tpu.memory_space<vmem>>) attributes {dimension_semantics = [#tpu.dimension_semantics<parallel>], iteration_bounds = array<i64: 1>, scalar_prefetch = 0 : i64, scratch_operands = 0 : i64, tpu.core_type = #tpu.core_type<tc>, window_params = [{transform_indices = @transform_0, window_bounds = array<i64: 16, 512>}, {transform_indices = @transform_1, window_bounds = array<i64: 16, 512>}]} {
    %c0 = arith.constant 0 : index
    %c0_0 = arith.constant 0 : index
    %0 = vector.load %arg1[%c0, %c0_0] : memref<16x512xf32, #tpu.memory_space<vmem>>, vector<16x512xf32>
    %cst = arith.constant 2.000000e+01 : f32
    %1 = vector.broadcast %cst : f32 to vector<16x512xf32>
    %2 = arith.minimumf %0, %1 : vector<16x512xf32>
    %cst_1 = arith.constant 2.000000e+01 : f32
    %3 = vector.broadcast %cst_1 : f32 to vector<16x512xf32>
    %4 = arith.cmpf ogt, %0, %3 : vector<16x512xf32>
    %5 = math.exp %2 : vector<16x512xf32>
    %6 = math.log1p %5 : vector<16x512xf32>
    %7 = arith.select %4, %0, %6 : vector<16x512xi1>, vector<16x512xf32>
    %cst_2 = arith.constant 0.693147182 : f32
    %8 = vector.broadcast %cst_2 : f32 to vector<16x512xf32>
    %9 = arith.subf %7, %8 : vector<16x512xf32>
    %c0_3 = arith.constant 0 : index
    %c0_4 = arith.constant 0 : index
    %10 = vector.load %arg2[%c0_3, %c0_4] : memref<16x512xf32, #tpu.memory_space<vmem>>, vector<16x512xf32>
    tpu.vector_store %arg2[%c0_3, %c0_4], %9 {strides = array<i32>} : memref<16x512xf32, #tpu.memory_space<vmem>>, vector<16x512xf32>,
    return
  }
  func.func @transform_0(%arg0: i32) -> (i32, i32) {
    %c0_i32 = arith.constant 0 : i32
    %c0_i32_0 = arith.constant 0 : i32
    return %arg0, %c0_i32 : i32, i32
  }
  func.func @transform_1(%arg0: i32) -> (i32, i32) {
    %c0_i32 = arith.constant 0 : i32
    %c0_i32_0 = arith.constant 0 : i32
    return %arg0, %c0_i32 : i32, i32
  }
}

</mosaic_0001>

<bundles_post_ra>
// kernel: tpu_custom_call.1
= control target key start
LH: loop header
LB: loop body
LE: loop exit
PB: predicated region body
PF: predicated region fallthrough
CT: control target
= control target key end

     0   :  { %6 = vsyncpa [#allocation3], 0  ;;  %s424_s0 = inlined_call_operand.hbm [shape: f32[16,512], index: 0, kind: input, shape index: {}]   ;;  %s425_s1 = inlined_call_operand.hbm [shape: f32[16,512], index: 1, kind: output, shape index: {}]  }
   0x1   :  { %7 = vsyncpa [#allocation4], 0  ;;  %s268_s6 = smov [#allocation2]   ;;  %s220_s10 = scalar_lea.hbm %s424_s0, 1024 }
   0x2   :  { %s13_s7 = sshll.u32 %s268_s6, 4  ;;  %p221_p0 = scmp.ne.s32.totalorder %s424_s0, %s220_s10  ;;  %s14_s7 = int_to_ptr.vmem [resolvable:$true] %s13_s7 }
   0x3   :  { %p224_p1 = scmp.lt.u32.totalorder %s220_s10, %s424_s0 }
   0x5   :  { %p226_p2 = pnand %p224_p1, %p221_p0 }
   0x7   :  { %229 = shalt.err (!%p226_p2)
}
   0x8   :  { %s230_s15 = scalar_lea.vmem %s14_s7, 1024  ;;  %p235_p4 = scmp.lt.s32.totalorder %s14_s7, %s14_s7 }
   0x9   :  { %p231_p3 = scmp.ne.s32.totalorder %s14_s7, %s230_s15  ;;  %p236_p5 = scmp.lt.s32.totalorder %s230_s15, %s230_s15 }
   0xb   :  { %p237_p6 = por %p236_p5, %p235_p4 }
   0xd   :  { %p238_p7 = pnand %p237_p6, %p231_p3 }
   0xf   :  { %241 = shalt.err (!%p238_p7)
}
  0x10   :  { %s269_s16 = smov 512   ;;  %s270_s17 = smov 32  }
  0x11   :  { %19 = dma.hbm_to_vmem [thread:$0]  %s424_s0, 1024, %s14_s7, [#allocation3], %s269_s16, %s269_s16, %s270_s17  }
  0x12   :  { %264 = dma.done.wait [#allocation3], 1024  }
  0x13   :  { %265 = vsyncadd [#allocation3], 4294966272  ;;  %v297_v0 = vld [vmem:[#allocation2] sm:$0xff]  ;;  %v299_v1 = vld [vmem:[#allocation2 + $0x8] sm:$0xff]  ;;  %s271_s0 = smov [#allocation5]  }
  0x14   :  { %v301_v2 = vld [vmem:[#allocation2 + $0x10] sm:$0xff]  ;;  %v31_v3 = vmin.f32 %v297_v0, 20.0  ;;  %v32_v4 = vmin.f32 %v299_v1, 20.0  ;;  %v305_v5 = vld [vmem:[#allocation2 + $0x18] sm:$0xff]  ;;  %v307_v6 = vld [vmem:[#allocation2 + $0x20] sm:$0xff]  ;;  %vm39_vm0 = vcmp.gt.f32.partialorder %v297_v0, 20.0 }
  0x15   :  { %v33_v7 = vmin.f32 %v301_v2, 20.0  ;;  %v34_v8 = vmin.f32 %v305_v5, 20.0  ;;  %v311_v9 = vld [vmem:[#allocation2 + $0x28] sm:$0xff]  ;;  %v313_v10 = vld [vmem:[#allocation2 + $0x30] sm:$0xff]  ;;  %v35_v13 = vmin.f32 %v307_v6, 20.0  ;;  %v318_v19 = vld [vmem:[#allocation2 + $0x38] sm:$0xff] }
  0x16   :  { %v47_v11 = vmul.f32 1.442695, %v31_v3  ;;  %v49_v12 = vmul.f32 1.442695, %v32_v4  ;;  %v36_v16 = vmin.f32 %v311_v9, 20.0  ;;  %v37_v18 = vmin.f32 %v313_v10, 20.0 }
  0x17   :  { %v51_v14 = vmul.f32 1.442695, %v33_v7  ;;  %v53_v15 = vmul.f32 1.442695, %v34_v8  ;;  %v55_v17 = vmul.f32 1.442695, %v35_v13 }
  0x18   :  { %188 = vpow2.f32 %v47_v11  ;;  %v38_v20 = vmin.f32 %v318_v19, 20.0  ;;  %v57_v21 = vmul.f32 1.442695, %v36_v16  ;;  %v59_v22 = vmul.f32 1.442695, %v37_v18  ;;  %s164_s20 = sshll.u32 %s271_s0, 4  ;;  %s165_s20 = int_to_ptr.vmem [resolvable:$true] %s164_s20 }
  0x19   :  { %190 = vpow2.f32 %v49_v12  ;;  %vm40_vm1 = vcmp.gt.f32.partialorder %v299_v1, 20.0  ;;  %vm41_vm2 = vcmp.gt.f32.partialorder %v301_v2, 20.0  ;;  %vm42_vm4 = vcmp.gt.f32.partialorder %v305_v5, 20.0  ;;  %s242_s21 = scalar_lea.vmem %s165_s20, 1024  ;;  %p247_p9 = scmp.lt.s32.totalorder %s165_s20, %s165_s20 }
  0x1a   :  { %192 = vpow2.f32 %v51_v14  ;;  %v61_v23 = vmul.f32 1.442695, %v38_v20  ;;  %vm43_vm6 = vcmp.gt.f32.partialorder %v307_v6, 20.0  ;;  %vm44_vm10 = vcmp.gt.f32.partialorder %v311_v9, 20.0  ;;  %p243_p8 = scmp.ne.s32.totalorder %s165_s20, %s242_s21  ;;  %p248_p10 = scmp.lt.s32.totalorder %s242_s21, %s242_s21 }
  0x1b   :  { %194 = vpow2.f32 %v53_v15  ;;  %vm45_vm13 = vcmp.gt.f32.partialorder %v313_v10, 20.0  ;;  %vm46_vm15 = vcmp.gt.f32.partialorder %v318_v19, 20.0 }
  0x1c   :  { %196 = vpow2.f32 %v55_v17  ;;  %p249_p11 = por %p248_p10, %p247_p9 }
  0x1d   :  { %198 = vpow2.f32 %v57_v21 }
  0x1e   :  { %200 = vpow2.f32 %v59_v22  ;;  %p250_p12 = pnand %p249_p11, %p243_p8 }
  0x1f   :  { %202 = vpow2.f32 %v61_v23 }
  0x22   :  { %v189_v24 = vpop.eup %188 }
  0x23   :  { %v191_v25 = vpop.eup %190  ;;  %v63_v26 = vadd.f32 1.0, %v189_v24  ;;  %v66_v32 = vmul.f32 -0.5, %v189_v24  ;;  %v69_v37 = vand.u32 2147483647, %v189_v24 }
  0x24   :  { %v193_v27 = vpop.eup %192  ;;  %v72_v28 = vadd.f32 1.0, %v191_v25  ;;  %v75_v33 = vmul.f32 -0.5, %v191_v25  ;;  %v78_v40 = vand.u32 2147483647, %v191_v25 }
  0x25   :  { %v195_v29 = vpop.eup %194  ;;  %204 = vlog2.f32 %v63_v26  ;;  %v81_v30 = vadd.f32 1.0, %v193_v27  ;;  %v84_v34 = vmul.f32 -0.5, %v193_v27  ;;  %v67_v42 = vadd.f32 1.0, %v66_v32 }
  0x26   :  { %v197_v31 = vpop.eup %196  ;;  %206 = vlog2.f32 %v72_v28  ;;  %v90_v35 = vadd.f32 1.0, %v195_v29  ;;  %v93_v38 = vmul.f32 -0.5, %v195_v29  ;;  %v76_v43 = vadd.f32 1.0, %v75_v33 }
  0x27   :  { %208 = vlog2.f32 %v81_v30  ;;  %v321_v36 = vpop.eup %198  ;;  %v99_v41 = vadd.f32 1.0, %v197_v31  ;;  %v102_v44 = vmul.f32 -0.5, %v197_v31  ;;  %v85_v46 = vadd.f32 1.0, %v84_v34 }
  0x28   :  { %v324_v39 = vpop.eup %200  ;;  %210 = vlog2.f32 %v90_v35  ;;  %v87_v47 = vand.u32 2147483647, %v193_v27  ;;  %v108_v48 = vadd.f32 1.0, %v321_v36  ;;  %vm331_vm3 = vcmp.lt.f32.partialorder %v69_v37, 0.0004427343 }
  0x29   :  { %v328_v45 = vpop.eup %202  ;;  %212 = vlog2.f32 %v99_v41  ;;  %v94_v50 = vadd.f32 1.0, %v93_v38  ;;  %v96_v51 = vand.u32 2147483647, %v195_v29  ;;  %v117_v52 = vadd.f32 1.0, %v324_v39 }
  0x2a   :  { %vm337_vm5 = vcmp.lt.f32.partialorder %v78_v40, 0.0004427343  ;;  %v105_v54 = vand.u32 2147483647, %v197_v31  ;;  %214 = vlog2.f32 %v108_v48  ;;  %v111_v55 = vmul.f32 -0.5, %v321_v36 }
  0x2b   :  { %v68_v56 = vmul.f32 %v189_v24, %v67_v42  ;;  %v103_v57 = vadd.f32 1.0, %v102_v44  ;;  %216 = vlog2.f32 %v117_v52  ;;  %v126_v58 = vadd.f32 1.0, %v328_v45 }
  0x2c   :  { %v77_v60 = vmul.f32 %v191_v25, %v76_v43  ;;  %v86_v61 = vmul.f32 %v193_v27, %v85_v46  ;;  %vm344_vm7 = vcmp.lt.f32.partialorder %v87_v47, 0.0004427343  ;;  %v120_v63 = vmul.f32 -0.5, %v324_v39 }
  0x2d   :  { %v95_v7 = vmul.f32 %v195_v29, %v94_v50  ;;  %vm349_vm8 = vcmp.lt.f32.partialorder %v96_v51, 0.0004427343  ;;  %218 = vlog2.f32 %v126_v58  ;;  %vm353_vm9 = vcmp.lt.f32.partialorder %v105_v54, 0.0004427343 }
  0x2e   :  { %v112_v14 = vadd.f32 1.0, %v111_v55  ;;  %v129_v15 = vmul.f32 -0.5, %v328_v45  ;;  %v104_v18 = vmul.f32 %v197_v31, %v103_v57  ;;  %v114_v20 = vand.u32 2147483647, %v321_v36 }
  0x2f   :  { %v205_v59 = vpop.eup %204  ;;  %v121_v24 = vadd.f32 1.0, %v120_v63  ;;  %v123_v25 = vand.u32 2147483647, %v324_v39 }
  0x30   :  { %v207_v3 = vpop.eup %206  ;;  %v65_v4 = vmul.f32 0.6931472, %v205_v59  ;;  %v113_v32 = vmul.f32 %v321_v36, %v112_v14  ;;  %v130_v33 = vadd.f32 1.0, %v129_v15  ;;  %vm383_vm11 = vcmp.lt.f32.partialorder %v114_v20, 0.0004427343 }
  0x31   :  { %v209_v11 = vpop.eup %208  ;;  %v74_v12 = vmul.f32 0.6931472, %v207_v3  ;;  %v122_v36 = vmul.f32 %v324_v39, %v121_v24  ;;  %vm390_vm12 = vcmp.lt.f32.partialorder %v123_v25, 0.0004427343 }
  0x32   :  { %v71_v16 = vsel %vm331_vm3, %v68_v56, %v65_v4  ;;  %v83_v17 = vmul.f32 0.6931472, %v209_v11  ;;  %v211_v21 = vpop.eup %210  ;;  %v131_v39 = vmul.f32 %v328_v45, %v130_v33 }
  0x33   :  { %v135_v22 = vsel %vm39_vm0, %v297_v0, %v71_v16  ;;  %v80_v23 = vsel %vm337_vm5, %v77_v60, %v74_v12  ;;  %v92_v29 = vmul.f32 0.6931472, %v211_v21  ;;  %v213_v30 = vpop.eup %212 }
  0x34   :  { %v176_v26 = vadd.f32 -0.6931472, %v135_v22  ;;  %v136_v27 = vsel %vm40_vm1, %v299_v1, %v80_v23  ;;  %v89_v28 = vsel %vm344_vm7, %v86_v61, %v83_v17  ;;  %v101_v37 = vmul.f32 0.6931472, %v213_v30  ;;  %v215_v38 = vpop.eup %214 }
  0x35   :  { %v177_v31 = vadd.f32 -0.6931472, %v136_v27  ;;  %v137_v0 = vsel %vm41_vm2, %v301_v2, %v89_v28  ;;  %v98_v35 = vsel %vm349_vm8, %v95_v7, %v92_v29  ;;  %v132_v1 = vand.u32 2147483647, %v328_v45  ;;  %v217_v41 = vpop.eup %216 }
  0x36   :  { %151 = vst [vmem:[#allocation5] sm:$0xff] %v176_v26  ;;  %v178_v34 = vadd.f32 -0.6931472, %v137_v0  ;;  %v138_v40 = vsel %vm42_vm4, %v305_v5, %v98_v35  ;;  %v107_v43 = vsel %vm353_vm9, %v104_v18, %v101_v37  ;;  %v110_v44 = vmul.f32 0.6931472, %v215_v38 }
  0x37   :  { %152 = vst [vmem:[#allocation5 + $0x8] sm:$0xff] %v177_v31  ;;  %v179_v42 = vadd.f32 -0.6931472, %v138_v40  ;;  %v139_v5 = vsel %vm43_vm6, %v307_v6, %v107_v43  ;;  %v119_v47 = vmul.f32 0.6931472, %v217_v41  ;;  %v219_v48 = vpop.eup %218 }
  0x38   :  { %153 = vst [vmem:[#allocation5 + $0x10] sm:$0xff] %v178_v34  ;;  %v180_v49 = vadd.f32 -0.6931472, %v139_v5  ;;  %v116_v50 = vsel %vm383_vm11, %v113_v32, %v110_v44  ;;  %vm133_vm14 = vcmp.lt.f32.partialorder %v132_v1, 0.0004427343 }
  0x39   :  { %154 = vst [vmem:[#allocation5 + $0x18] sm:$0xff] %v179_v42  ;;  %v140_v51 = vsel %vm44_vm10, %v311_v9, %v116_v50  ;;  %v125_v52 = vsel %vm390_vm12, %v122_v36, %v119_v47  ;;  %v128_v6 = vmul.f32 0.6931472, %v219_v48 }
  0x3a   :  { %155 = vst [vmem:[#allocation5 + $0x20] sm:$0xff] %v180_v49  ;;  %v181_v53 = vadd.f32 -0.6931472, %v140_v51  ;;  %v141_v45 = vsel %vm45_vm13, %v313_v10, %v125_v52 }
  0x3b   :  { %v182_v54 = vadd.f32 -0.6931472, %v141_v45  ;;  %v134_v55 = vsel %vm133_vm14, %v131_v39, %v128_v6 }
  0x3c   :  { %156 = vst [vmem:[#allocation5 + $0x28] sm:$0xff] %v181_v53  ;;  %v142_v56 = vsel %vm46_vm15, %v318_v19, %v134_v55 }
  0x3d   :  { %157 = vst [vmem:[#allocation5 + $0x30] sm:$0xff] %v182_v54  ;;  %v183_v57 = vadd.f32 -0.6931472, %v142_v56 }
  0x3f   :  { %158 = vst [vmem:[#allocation5 + $0x38] sm:$0xff] %v183_v57 }
  0x40   :  { %253 = shalt.err (!%p250_p12)
}
  0x41   :  { %s254_s24 = scalar_lea.hbm %s425_s1, 1024 }
  0x42   :  { %p255_p13 = scmp.ne.s32.totalorder %s425_s1, %s254_s24  ;;  %p258_p0 = scmp.lt.u32.totalorder %s254_s24, %s425_s1 }
  0x44   :  { %p260_p1 = pnand %p258_p0, %p255_p13 }
  0x46   :  { %263 = shalt.err (!%p260_p1)
}
  0x47   :  { %170 = dma.vmem_to_hbm [thread:$0]  %s165_s20, 1024, %s425_s1, [#allocation4], %s269_s16, %s269_s16, %s270_s17  }
  0x48   :  { %266 = dma.done.wait [#allocation4], 1024  }
  0x49   :  { %267 = vsyncadd [#allocation4], 4294966272 }
  0x4a   :  { %174 = vsyncpa [#allocation3], 1 }
  0x4b   :  { %175 = vsyncpa [#allocation4], 1 }

</bundles_post_ra>
